<compile_context>
chip_gen: v5e
topology: v5e:2x2
jax: 0.10.0
libtpu: 0.0.40
codegen_flags: <defaults>
</compile_context>

<pallas_src>
import functools

import jax
import jax.numpy as jnp
from jax import lax
from jax.experimental import pallas as pl
from jax.experimental.pallas import tpu as pltpu


def _round_up(x, m):
    return ((x + m - 1) // m) * m


# ---------------------------------------------------------------------------
# Fused Pallas kernel
# ---------------------------------------------------------------------------

def _jasper_block_kernel(x_ref, wsub_ref, ssub_ref, bsub_ref,
                         wres_ref, sres_ref, bres_ref,
                         wfh_ref, sfh_ref, bfh_ref,
                         o_ref, *, r, K, T, tile_t):
    """Whole JasperBlock for one (batch, time-tile) grid point.

    x_ref   : (Tp_total, Cin_p)  bf16, zero-padded by H=(r+1)*P on each side
    wsub_ref: (r_eff, K*Cin_p, Cin_p) bf16  stacked subblock conv weights
    ssub/bsub: (r_eff, 1, Cin_p) f32        folded BN scale / bias
    wres_ref: (Cin_p, Cout_p) bf16          1x1 residual conv
    wfh_ref : (K*Cin_p, Cout_p) bf16        first-half conv
    s*/b*   : (1, Cout_p) f32
    o_ref   : (tile_t, Cout_p)
    """
    P = K // 2
    H = (r + 1) * P
    j = pl.program_id(1)
    t0 = pl.multiple_of(j * tile_t, 16)          # tile_t is a multiple of 16

    # Extended input window: row e <-> global time position (t0 - H + e).
    # The wrapper's single zero pad already makes out-of-sequence rows zero.
    x_win = x_ref[pl.ds(t0, tile_t + 2 * H), :]  # bf16 (tile_t + 2H, Cin_p)

    def conv(inp, w_flat):
        """K-tap conv as one deep contraction. inp: (L_out + 2P, C) bf16."""
        L_out = inp.shape[0] - 2 * P
        if K == 1:
            lhs = inp
        else:
            lhs = jnp.concatenate([inp[k:k + L_out, :] for k in range(K)],
                                  axis=-1)        # (L_out, K*C)
        acc = jnp.dot(lhs, w_flat, preferred_element_type=jnp.float32)
        return acc, L_out

    # --- r sequential subblocks: Conv -> BN -> ReLU (Dropout identity) -----
    h = x_win
    for i in range(r):                            # static unroll over stages
        halo_out = (r - i) * P
        acc, L_out = conv(h, wsub_ref[i])
        y = jnp.maximum(acc * ssub_ref[i] + bsub_ref[i], 0.0)
        # Rows outside the valid sequence [0, T) must be ZERO: they play the
        # role of the next conv layer's own zero padding in the PyTorch model.
        g = t0 - halo_out + lax.broadcasted_iota(jnp.int32, (L_out, 1), 0)
        y = jnp.where((g >= 0) & (g < T), y, 0.0)
        h = y.astype(jnp.bfloat16)
    # h now has halo P on each side (also true for r == 0).

    # --- residual connection: 1x1 conv + BN on the original input ----------
    x_mid = x_win[H:H + tile_t, :]                # rows for [t0, t0 + tile_t)
    res = jnp.dot(x_mid, wres_ref[...], preferred_element_type=jnp.float32)
    res = res * sres_ref[...] + bres_ref[...]

    # --- first half subblock: K-tap conv + BN on the subblock-stack output -
    acc, _ = conv(h, wfh_ref[...])
    fh = acc * sfh_ref[...] + bfh_ref[...]

    # --- second half subblock: ReLU (Dropout identity) ----------------------
    o_ref[...] = jnp.maximum(res + fh, 0.0).astype(o_ref.dtype)


# ---------------------------------------------------------------------------
# Wrapper: layout, padding, BN folding, BlockSpecs
# ---------------------------------------------------------------------------

def _fold_bn_padded(p, c_pad, eps=1e-5):
    """Fold Conv1d bias + eval-mode BN into y = conv*s + b, lane-padded."""
    s = p["gamma"] / jnp.sqrt(p["var"] + eps)
    b = (p["conv_b"] - p["mean"]) * s + p["beta"]
    c = s.shape[0]
    s = jnp.pad(s, (0, c_pad - c)).astype(jnp.float32)
    b = jnp.pad(b, (0, c_pad - c)).astype(jnp.float32)
    return s[None, :], b[None, :]


def _prep_weight(w_oik, cin_p, cout_p):
    """PyTorch (C_out, C_in, K) -> flattened (K*cin_p, cout_p) bf16."""
    co, ci, k = w_oik.shape
    w_kio = jnp.transpose(w_oik, (2, 1, 0))                       # (K, Cin, Cout)
    w_kio = jnp.pad(w_kio, ((0, 0), (0, cin_p - ci), (0, cout_p - co)))
    return w_kio.reshape(k * cin_p, cout_p).astype(jnp.bfloat16)


def jasper_block_forward(x_nct, params, r, K, tile_t_max=256):
    """Full JasperBlock forward. x_nct: (N, C_in, T) -> (N, C_out, T)."""
    assert K % 2 == 1, "odd kernel_width keeps T unchanged (padding = K // 2)"
    N, Cin, T = x_nct.shape
    Cout = params["residual"]["conv_w"].shape[0]
    P = K // 2
    H = (r + 1) * P

    Cin_p = _round_up(Cin, 128)                   # lane-dense channels
    Cout_p = _round_up(Cout, 128)
    tile_t = min(_round_up(T, 16), tile_t_max)    # multiple of 16 (bf16 packing)
    num_t = pl.cdiv(T, tile_t)
    T_pad = num_t * tile_t
    Tp_total = T_pad + 2 * H

    # Single zero pad of the input: total conv halo + time round-up + lanes.
    x_ntc = jnp.transpose(x_nct, (0, 2, 1))       # NCT -> NTC (channels last)
    x_p = jnp.pad(x_ntc, ((0, 0), (H, T_pad - T + H), (0, Cin_p - Cin)))
    x_p = x_p.astype(jnp.bfloat16)

    # Subblock weights / folded BN, stacked along a leading r axis.
    r_eff = max(r, 1)
    if r > 0:
        w_sub = jnp.stack([_prep_weight(params["subblocks"][i]["conv_w"],
                                        Cin_p, Cin_p) for i in range(r)])
        s_list, b_list = zip(*[_fold_bn_padded(params["subblocks"][i], Cin_p)
                               for i in range(r)])
        s_sub = jnp.stack(s_list)
        b_sub = jnp.stack(b_list)
    else:  # dummy (never read inside the kernel)
        w_sub = jnp.zeros((1, K * Cin_p, Cin_p), jnp.bfloat16)
        s_sub = jnp.zeros((1, 1, Cin_p), jnp.float32)
        b_sub = jnp.zeros((1, 1, Cin_p), jnp.float32)

    wres = _prep_weight(params["residual"]["conv_w"], Cin_p, Cout_p)
    sres, bres = _fold_bn_padded(params["residual"], Cout_p)
    wfh = _prep_weight(params["first_half"]["conv_w"], Cin_p, Cout_p)
    sfh, bfh = _fold_bn_padded(params["first_half"], Cout_p)

    # Explicit scoped-VMEM limit from the double-buffered working set,
    # capped at 64 MiB so the same plan is valid on v5e / v6e / v7x.
    def _nbytes(a):
        return int(a.size) * a.dtype.itemsize
    w_bytes = sum(_nbytes(a) for a in
                  (w_sub, s_sub, b_sub, wres, sres, bres, wfh, sfh, bfh))
    x_bytes = Tp_total * Cin_p * 2
    o_bytes = tile_t * Cout_p * 4
    tmp_bytes = 8 * (tile_t + 2 * H) * max(K * Cin_p, Cout_p) * 4
    vmem_limit = 2 * x_bytes + 2 * w_bytes + 2 * o_bytes + tmp_bytes + (4 << 20)
    vmem_limit = int(min(max(vmem_limit, 8 << 20), 64 << 20))

    kern = functools.partial(_jasper_block_kernel, r=r, K=K, T=T, tile_t=tile_t)
    out_p = pl.pallas_call(
        kern,
        out_shape=jax.ShapeDtypeStruct((N, T_pad, Cout_p), x_nct.dtype),
        grid=(N, num_t),
        in_specs=[
            # Whole padded time slab per batch element; index_map is invariant
            # in the time-tile axis so it is fetched from HBM once per n.
            pl.BlockSpec((None, Tp_total, Cin_p), lambda n, j: (n, 0, 0)),
            pl.BlockSpec((r_eff, K * Cin_p, Cin_p), lambda n, j: (0, 0, 0)),
            pl.BlockSpec((r_eff, 1, Cin_p), lambda n, j: (0, 0, 0)),
            pl.BlockSpec((r_eff, 1, Cin_p), lambda n, j: (0, 0, 0)),
            pl.BlockSpec((Cin_p, Cout_p), lambda n, j: (0, 0)),
            pl.BlockSpec((1, Cout_p), lambda n, j: (0, 0)),
            pl.BlockSpec((1, Cout_p), lambda n, j: (0, 0)),
            pl.BlockSpec((K * Cin_p, Cout_p), lambda n, j: (0, 0)),
            pl.BlockSpec((1, Cout_p), lambda n, j: (0, 0)),
            pl.BlockSpec((1, Cout_p), lambda n, j: (0, 0)),
        ],
        out_specs=pl.BlockSpec((None, tile_t, Cout_p), lambda n, j: (n, j, 0)),
        compiler_params=pltpu.CompilerParams(
            dimension_semantics=("parallel", "parallel"),
            vmem_limit_bytes=vmem_limit),
    )(x_p, w_sub, s_sub, b_sub, wres, sres, bres, wfh, sfh, bfh)

    out_ntc = out_p[:, :T, :Cout]
    return jnp.transpose(out_ntc, (0, 2, 1))      # NTC -> NCT


# ---------------------------------------------------------------------------
# Pure-JAX f32 reference (lax.conv) for correctness check
# ---------------------------------------------------------------------------

def _ref_conv_bn(x_nct, w_oik, b, gamma, beta, mean, var, pad, relu):
    y = lax.conv_general_dilated(
        x_nct, w_oik, window_strides=(1,), padding=[(pad, pad)],
        dimension_numbers=("NCH", "OIH", "NCH"))
    y = y + b[None, :, None]
    s = gamma / jnp.sqrt(var + 1e-5)
    y = (y - mean[None, :, None]) * s[None, :, None] + beta[None, :, None]
    return jnp.maximum(y, 0.0) if relu else y


def jasper_block_reference(x_nct, params, r, K):
    h = x_nct
    for i in range(r):
        p = params["subblocks"][i]
        h = _ref_conv_bn(h, p["conv_w"], p["conv_b"], p["gamma"], p["beta"],
                         p["mean"], p["var"], K // 2, relu=True)
    pr = params["residual"]
    x2 = _ref_conv_bn(x_nct, pr["conv_w"], pr["conv_b"], pr["gamma"],
                      pr["beta"], pr["mean"], pr["var"], 0, relu=False)
    pf = params["first_half"]
    x3 = _ref_conv_bn(h, pf["conv_w"], pf["conv_b"], pf["gamma"], pf["beta"],
                      pf["mean"], pf["var"], K // 2, relu=False)
    return jnp.maximum(x2 + x3, 0.0)


# ---------------------------------------------------------------------------
# Deterministic parameter construction
# ---------------------------------------------------------------------------

def _bf16_representable(a):
    # Round-trip through bf16 so the f32 reference isolates kernel correctness
    # (only intermediate-activation bf16 rounding differs between paths).
    return a.astype(jnp.bfloat16).astype(jnp.float32)


def _make_conv_bn_params(key, c_out, c_in, k):
    ks = jax.random.split(key, 6)
    return {
        "conv_w": _bf16_representable(
            0.2 * jax.random.normal(ks[0], (c_out, c_in, k), jnp.float32)),
        "conv_b": 0.1 * jax.random.normal(ks[1], (c_out,), jnp.float32),
        "gamma": 1.0 + 0.1 * jax.random.normal(ks[2], (c_out,), jnp.float32),
        "beta": 0.1 * jax.random.normal(ks[3], (c_out,), jnp.float32),
        "mean": 0.1 * jax.random.normal(ks[4], (c_out,), jnp.float32),
        "var": 0.5 + jnp.abs(jax.random.normal(ks[5], (c_out,), jnp.float32)),
    }


if __name__ == "__main__":
    # Small shapes consistent with JasperBlock(r, in_channels, out_channels, kw)
    r, C_IN, C_OUT, K, T, N = 2, 8, 16, 3, 16, 2
    assert K % 2 == 1

    root = jax.random.PRNGKey(0)
    k_x, k_p = jax.random.split(root)
    x = _bf16_representable(
        jax.random.normal(k_x, (N, C_IN, T), jnp.float32))   # PyTorch NCT layout

    pkeys = jax.random.split(k_p, r + 2)
    params = {
        "subblocks": [_make_conv_bn_params(pkeys[i], C_IN, C_IN, K)
                      for i in range(r)],
        "residual": _make_conv_bn_params(pkeys[r], C_OUT, C_IN, 1),
        "first_half": _make_conv_bn_params(pkeys[r + 1], C_OUT, C_IN, K),
    }

    out = jasper_block_forward(x, params, r, K)
    out = jax.block_until_ready(out)

    ref = jasper_block_reference(x, params, r, K)
    assert out.shape == (N, C_OUT, T), out.shape
    # bf16 activations between fused stages -> compare at a few 1e-2.
    assert jnp.allclose(out, ref, atol=5e-2, rtol=5e-2), (
        float(jnp.max(jnp.abs(out - ref))))

    print("KERNEL_OK")
</pallas_src>

<mosaic_0001>
module attributes {stable_mosaic.version = 11 : i64} {
  func.func @_jasper_block_kernel(%arg0: i32, %arg1: i32, %arg2: memref<1x22x128xbf16, #tpu.memory_space<vmem>>, %arg3: memref<2x384x128xbf16, #tpu.memory_space<vmem>>, %arg4: memref<2x1x128xf32, #tpu.memory_space<vmem>>, %arg5: memref<2x1x128xf32, #tpu.memory_space<vmem>>, %arg6: memref<128x128xbf16, #tpu.memory_space<vmem>>, %arg7: memref<1x128xf32, #tpu.memory_space<vmem>>, %arg8: memref<1x128xf32, #tpu.memory_space<vmem>>, %arg9: memref<384x128xbf16, #tpu.memory_space<vmem>>, %arg10: memref<1x128xf32, #tpu.memory_space<vmem>>, %arg11: memref<1x128xf32, #tpu.memory_space<vmem>>, %arg12: memref<1x16x128xf32, #tpu.memory_space<vmem>>) attributes {dimension_semantics = [#tpu.dimension_semantics<parallel>, #tpu.dimension_semantics<parallel>], iteration_bounds = array<i64: 2, 1>, scalar_prefetch = 0 : i64, scratch_operands = 0 : i64, tpu.core_type = #tpu.core_type<tc>, window_params = [{transform_indices = @transform_0, window_bounds = array<i64: 1, 22, 128>}, {pipeline_mode = #tpu.pipeline_mode<synchronous>, transform_indices = @transform_1, window_bounds = array<i64: 2, 384, 128>}, {pipeline_mode = #tpu.pipeline_mode<synchronous>, transform_indices = @transform_2, window_bounds = array<i64: 2, 1, 128>}, {pipeline_mode = #tpu.pipeline_mode<synchronous>, transform_indices = @transform_3, window_bounds = array<i64: 2, 1, 128>}, {pipeline_mode = #tpu.pipeline_mode<synchronous>, transform_indices = @transform_4, window_bounds = array<i64: 128, 128>}, {pipeline_mode = #tpu.pipeline_mode<synchronous>, transform_indices = @transform_5, window_bounds = array<i64: 1, 128>}, {pipeline_mode = #tpu.pipeline_mode<synchronous>, transform_indices = @transform_6, window_bounds = array<i64: 1, 128>}, {pipeline_mode = #tpu.pipeline_mode<synchronous>, transform_indices = @transform_7, window_bounds = array<i64: 384, 128>}, {pipeline_mode = #tpu.pipeline_mode<synchronous>, transform_indices = @transform_8, window_bounds = array<i64: 1, 128>}, {pipeline_mode = #tpu.pipeline_mode<synchronous>, transform_indices = @transform_9, window_bounds = array<i64: 1, 128>}, {transform_indices = @transform_10, window_bounds = array<i64: 1, 16, 128>}]} {
    %c16_i32 = arith.constant 16 : i32
    %0 = arith.muli %arg1, %c16_i32 : i32
    %1 = tpu.assume_multiple %0, 16 : i32
    %c0 = arith.constant 0 : index
    %2 = arith.index_cast %1 : i32 to index
    %c0_0 = arith.constant 0 : index
    %3 = vector.load %arg2[%c0, %2, %c0_0] : memref<1x22x128xbf16, #tpu.memory_space<vmem>>, vector<1x22x128xbf16>
    %4 = vector.shape_cast %3 : vector<1x22x128xbf16> to vector<22x128xbf16>
    %c0_1 = arith.constant 0 : index
    %c0_2 = arith.constant 0 : index
    %c0_3 = arith.constant 0 : index
    %5 = vector.load %arg3[%c0_1, %c0_2, %c0_3] : memref<2x384x128xbf16, #tpu.memory_space<vmem>>, vector<1x384x128xbf16>
    %6 = vector.shape_cast %5 : vector<1x384x128xbf16> to vector<384x128xbf16>
    %7 = vector.extract_strided_slice %4 {offsets = [0, 0], sizes = [20, 128], strides = [1, 1]} : vector<22x128xbf16> to vector<20x128xbf16>
    %8 = vector.extract_strided_slice %4 {offsets = [1, 0], sizes = [20, 128], strides = [1, 1]} : vector<22x128xbf16> to vector<20x128xbf16>
    %9 = vector.extract_strided_slice %4 {offsets = [2, 0], sizes = [20, 128], strides = [1, 1]} : vector<22x128xbf16> to vector<20x128xbf16>
    %10 = tpu.concatenate %7, %8, %9 in 1 : vector<20x128xbf16>, vector<20x128xbf16>, vector<20x128xbf16> -> vector<20x384xbf16>
    %cst = arith.constant dense<0.000000e+00> : vector<20x128xf32>
    %11 = tpu.matmul %10, %6, %cst {dimension_numbers = #tpu.dot_dimension_numbers<[1], [0], [0], [1], [0, 0, 1, 1], [], []>} : vector<20x384xbf16>, vector<384x128xbf16>, vector<20x128xf32> -> vector<20x128xf32>
    %c0_4 = arith.constant 0 : index
    %c0_5 = arith.constant 0 : index
    %c0_6 = arith.constant 0 : index
    %12 = vector.load %arg4[%c0_4, %c0_5, %c0_6] : memref<2x1x128xf32, #tpu.memory_space<vmem>>, vector<1x1x128xf32>
    %13 = vector.shape_cast %12 : vector<1x1x128xf32> to vector<1x128xf32>
    %14 = vector.broadcast %13 : vector<1x128xf32> to vector<20x128xf32>
    %15 = arith.mulf %11, %14 : vector<20x128xf32>
    %c0_7 = arith.constant 0 : index
    %c0_8 = arith.constant 0 : index
    %c0_9 = arith.constant 0 : index
    %16 = vector.load %arg5[%c0_7, %c0_8, %c0_9] : memref<2x1x128xf32, #tpu.memory_space<vmem>>, vector<1x1x128xf32>
    %17 = vector.shape_cast %16 : vector<1x1x128xf32> to vector<1x128xf32>
    %18 = vector.broadcast %17 : vector<1x128xf32> to vector<20x128xf32>
    %19 = arith.addf %15, %18 : vector<20x128xf32>
    %cst_10 = arith.constant 0.000000e+00 : f32
    %20 = vector.broadcast %cst_10 : f32 to vector<20x128xf32>
    %21 = arith.maximumf %19, %20 : vector<20x128xf32>
    %c2_i32 = arith.constant 2 : i32
    %22 = arith.subi %1, %c2_i32 : i32
    %23 = tpu.iota {dimensions = array<i32: 0>} : vector<20x1xi32>
    %24 = vector.broadcast %22 : i32 to vector<20x1xi32>
    %25 = arith.addi %24, %23 : vector<20x1xi32>
    %c0_i32 = arith.constant 0 : i32
    %26 = vector.broadcast %c0_i32 : i32 to vector<20x1xi32>
    %27 = arith.cmpi sge, %25, %26 : vector<20x1xi32>
    %c16_i32_11 = arith.constant 16 : i32
    %28 = vector.broadcast %c16_i32_11 : i32 to vector<20x1xi32>
    %29 = arith.cmpi slt, %25, %28 : vector<20x1xi32>
    %30 = arith.andi %27, %29 : vector<20x1xi1>
    %cst_12 = arith.constant 0.000000e+00 : f32
    %31 = vector.shape_cast %30 : vector<20x1xi1> to vector<20x1xi1>
    %32 = vector.broadcast %31 : vector<20x1xi1> to vector<20x128xi1>
    %33 = vector.broadcast %cst_12 : f32 to vector<20x128xf32>
    %34 = arith.select %32, %21, %33 : vector<20x128xi1>, vector<20x128xf32>
    %35 = arith.truncf %34 : vector<20x128xf32> to vector<20x128xbf16>
    %c1 = arith.constant 1 : index
    %c0_13 = arith.constant 0 : index
    %c0_14 = arith.constant 0 : index
    %36 = vector.load %arg3[%c1, %c0_13, %c0_14] : memref<2x384x128xbf16, #tpu.memory_space<vmem>>, vector<1x384x128xbf16>
    %37 = vector.shape_cast %36 : vector<1x384x128xbf16> to vector<384x128xbf16>
    %38 = vector.extract_strided_slice %35 {offsets = [0, 0], sizes = [18, 128], strides = [1, 1]} : vector<20x128xbf16> to vector<18x128xbf16>
    %39 = vector.extract_strided_slice %35 {offsets = [1, 0], sizes = [18, 128], strides = [1, 1]} : vector<20x128xbf16> to vector<18x128xbf16>
    %40 = vector.extract_strided_slice %35 {offsets = [2, 0], sizes = [18, 128], strides = [1, 1]} : vector<20x128xbf16> to vector<18x128xbf16>
    %41 = tpu.concatenate %38, %39, %40 in 1 : vector<18x128xbf16>, vector<18x128xbf16>, vector<18x128xbf16> -> vector<18x384xbf16>
    %cst_15 = arith.constant dense<0.000000e+00> : vector<18x128xf32>
    %42 = tpu.matmul %41, %37, %cst_15 {dimension_numbers = #tpu.dot_dimension_numbers<[1], [0], [0], [1], [0, 0, 1, 1], [], []>} : vector<18x384xbf16>, vector<384x128xbf16>, vector<18x128xf32> -> vector<18x128xf32>
    %c1_16 = arith.constant 1 : index
    %c0_17 = arith.constant 0 : index
    %c0_18 = arith.constant 0 : index
    %43 = vector.load %arg4[%c1_16, %c0_17, %c0_18] : memref<2x1x128xf32, #tpu.memory_space<vmem>>, vector<1x1x128xf32>
    %44 = vector.shape_cast %43 : vector<1x1x128xf32> to vector<1x128xf32>
    %45 = vector.broadcast %44 : vector<1x128xf32> to vector<18x128xf32>
    %46 = arith.mulf %42, %45 : vector<18x128xf32>
    %c1_19 = arith.constant 1 : index
    %c0_20 = arith.constant 0 : index
    %c0_21 = arith.constant 0 : index
    %47 = vector.load %arg5[%c1_19, %c0_20, %c0_21] : memref<2x1x128xf32, #tpu.memory_space<vmem>>, vector<1x1x128xf32>
    %48 = vector.shape_cast %47 : vector<1x1x128xf32> to vector<1x128xf32>
    %49 = vector.broadcast %48 : vector<1x128xf32> to vector<18x128xf32>
    %50 = arith.addf %46, %49 : vector<18x128xf32>
    %cst_22 = arith.constant 0.000000e+00 : f32
    %51 = vector.broadcast %cst_22 : f32 to vector<18x128xf32>
    %52 = arith.maximumf %50, %51 : vector<18x128xf32>
    %c1_i32 = arith.constant 1 : i32
    %53 = arith.subi %1, %c1_i32 : i32
    %54 = tpu.iota {dimensions = array<i32: 0>} : vector<18x1xi32>
    %55 = vector.broadcast %53 : i32 to vector<18x1xi32>
    %56 = arith.addi %55, %54 : vector<18x1xi32>
    %c0_i32_23 = arith.constant 0 : i32
    %57 = vector.broadcast %c0_i32_23 : i32 to vector<18x1xi32>
    %58 = arith.cmpi sge, %56, %57 : vector<18x1xi32>
    %c16_i32_24 = arith.constant 16 : i32
    %59 = vector.broadcast %c16_i32_24 : i32 to vector<18x1xi32>
    %60 = arith.cmpi slt, %56, %59 : vector<18x1xi32>
    %61 = arith.andi %58, %60 : vector<18x1xi1>
    %cst_25 = arith.constant 0.000000e+00 : f32
    %62 = vector.shape_cast %61 : vector<18x1xi1> to vector<18x1xi1>
    %63 = vector.broadcast %62 : vector<18x1xi1> to vector<18x128xi1>
    %64 = vector.broadcast %cst_25 : f32 to vector<18x128xf32>
    %65 = arith.select %63, %52, %64 : vector<18x128xi1>, vector<18x128xf32>
    %66 = arith.truncf %65 : vector<18x128xf32> to vector<18x128xbf16>
    %67 = vector.extract_strided_slice %4 {offsets = [3, 0], sizes = [16, 128], strides = [1, 1]} : vector<22x128xbf16> to vector<16x128xbf16>
    %c0_26 = arith.constant 0 : index
    %c0_27 = arith.constant 0 : index
    %68 = vector.load %arg6[%c0_26, %c0_27] : memref<128x128xbf16, #tpu.memory_space<vmem>>, vector<128x128xbf16>
    %cst_28 = arith.constant dense<0.000000e+00> : vector<16x128xf32>
    %69 = tpu.matmul %67, %68, %cst_28 {dimension_numbers = #tpu.dot_dimension_numbers<[1], [0], [0], [1], [0, 0, 1, 1], [], []>} : vector<16x128xbf16>, vector<128x128xbf16>, vector<16x128xf32> -> vector<16x128xf32>
    %c0_29 = arith.constant 0 : index
    %c0_30 = arith.constant 0 : index
    %70 = vector.load %arg7[%c0_29, %c0_30] : memref<1x128xf32, #tpu.memory_space<vmem>>, vector<1x128xf32>
    %71 = vector.broadcast %70 : vector<1x128xf32> to vector<16x128xf32>
    %72 = arith.mulf %69, %71 : vector<16x128xf32>
    %c0_31 = arith.constant 0 : index
    %c0_32 = arith.constant 0 : index
    %73 = vector.load %arg8[%c0_31, %c0_32] : memref<1x128xf32, #tpu.memory_space<vmem>>, vector<1x128xf32>
    %74 = vector.broadcast %73 : vector<1x128xf32> to vector<16x128xf32>
    %75 = arith.addf %72, %74 : vector<16x128xf32>
    %c0_33 = arith.constant 0 : index
    %c0_34 = arith.constant 0 : index
    %76 = vector.load %arg9[%c0_33, %c0_34] : memref<384x128xbf16, #tpu.memory_space<vmem>>, vector<384x128xbf16>
    %77 = vector.extract_strided_slice %66 {offsets = [0, 0], sizes = [16, 128], strides = [1, 1]} : vector<18x128xbf16> to vector<16x128xbf16>
    %78 = vector.extract_strided_slice %66 {offsets = [1, 0], sizes = [16, 128], strides = [1, 1]} : vector<18x128xbf16> to vector<16x128xbf16>
    %79 = vector.extract_strided_slice %66 {offsets = [2, 0], sizes = [16, 128], strides = [1, 1]} : vector<18x128xbf16> to vector<16x128xbf16>
    %80 = tpu.concatenate %77, %78, %79 in 1 : vector<16x128xbf16>, vector<16x128xbf16>, vector<16x128xbf16> -> vector<16x384xbf16>
    %cst_35 = arith.constant dense<0.000000e+00> : vector<16x128xf32>
    %81 = tpu.matmul %80, %76, %cst_35 {dimension_numbers = #tpu.dot_dimension_numbers<[1], [0], [0], [1], [0, 0, 1, 1], [], []>} : vector<16x384xbf16>, vector<384x128xbf16>, vector<16x128xf32> -> vector<16x128xf32>
    %c0_36 = arith.constant 0 : index
    %c0_37 = arith.constant 0 : index
    %82 = vector.load %arg10[%c0_36, %c0_37] : memref<1x128xf32, #tpu.memory_space<vmem>>, vector<1x128xf32>
    %83 = vector.broadcast %82 : vector<1x128xf32> to vector<16x128xf32>
    %84 = arith.mulf %81, %83 : vector<16x128xf32>
    %c0_38 = arith.constant 0 : index
    %c0_39 = arith.constant 0 : index
    %85 = vector.load %arg11[%c0_38, %c0_39] : memref<1x128xf32, #tpu.memory_space<vmem>>, vector<1x128xf32>
    %86 = vector.broadcast %85 : vector<1x128xf32> to vector<16x128xf32>
    %87 = arith.addf %84, %86 : vector<16x128xf32>
    %88 = arith.addf %75, %87 : vector<16x128xf32>
    %cst_40 = arith.constant 0.000000e+00 : f32
    %89 = vector.broadcast %cst_40 : f32 to vector<16x128xf32>
    %90 = arith.maximumf %88, %89 : vector<16x128xf32>
    %c0_41 = arith.constant 0 : index
    %c0_42 = arith.constant 0 : index
    %c0_43 = arith.constant 0 : index
    %91 = vector.load %arg12[%c0_41, %c0_42, %c0_43] : memref<1x16x128xf32, #tpu.memory_space<vmem>>, vector<1x16x128xf32>
    %92 = vector.shape_cast %91 : vector<1x16x128xf32> to vector<16x128xf32>
    %93 = vector.shape_cast %90 : vector<16x128xf32> to vector<1x16x128xf32>
    tpu.vector_store %arg12[%c0_41, %c0_42, %c0_43], %93 {strides = array<i32>} : memref<1x16x128xf32, #tpu.memory_space<vmem>>, vector<1x16x128xf32>,
    return
  }
  func.func @transform_0(%arg0: i32, %arg1: i32) -> (i32, i32, i32) {
    %c0_i32 = arith.constant 0 : i32
    %c0_i32_0 = arith.constant 0 : i32
    %c0_i32_1 = arith.constant 0 : i32
    return %arg0, %c0_i32, %c0_i32_0 : i32, i32, i32
  }
  func.func @transform_1(%arg0: i32, %arg1: i32) -> (i32, i32, i32) {
    %c0_i32 = arith.constant 0 : i32
    %c0_i32_0 = arith.constant 0 : i32
    %c0_i32_1 = arith.constant 0 : i32
    %c0_i32_2 = arith.constant 0 : i32
    return %c0_i32, %c0_i32_0, %c0_i32_1 : i32, i32, i32
  }
  func.func @transform_2(%arg0: i32, %arg1: i32) -> (i32, i32, i32) {
    %c0_i32 = arith.constant 0 : i32
    %c0_i32_0 = arith.constant 0 : i32
    %c0_i32_1 = arith.constant 0 : i32
    %c0_i32_2 = arith.constant 0 : i32
    return %c0_i32, %c0_i32_0, %c0_i32_1 : i32, i32, i32
  }
  func.func @transform_3(%arg0: i32, %arg1: i32) -> (i32, i32, i32) {
    %c0_i32 = arith.constant 0 : i32
    %c0_i32_0 = arith.constant 0 : i32
    %c0_i32_1 = arith.constant 0 : i32
    %c0_i32_2 = arith.constant 0 : i32
    return %c0_i32, %c0_i32_0, %c0_i32_1 : i32, i32, i32
  }
  func.func @transform_4(%arg0: i32, %arg1: i32) -> (i32, i32) {
    %c0_i32 = arith.constant 0 : i32
    %c0_i32_0 = arith.constant 0 : i32
    %c0_i32_1 = arith.constant 0 : i32
    return %c0_i32, %c0_i32_0 : i32, i32
  }
  func.func @transform_5(%arg0: i32, %arg1: i32) -> (i32, i32) {
    %c0_i32 = arith.constant 0 : i32
    %c0_i32_0 = arith.constant 0 : i32
    %c0_i32_1 = arith.constant 0 : i32
    return %c0_i32, %c0_i32_0 : i32, i32
  }
  func.func @transform_6(%arg0: i32, %arg1: i32) -> (i32, i32) {
    %c0_i32 = arith.constant 0 : i32
    %c0_i32_0 = arith.constant 0 : i32
    %c0_i32_1 = arith.constant 0 : i32
    return %c0_i32, %c0_i32_0 : i32, i32
  }
  func.func @transform_7(%arg0: i32, %arg1: i32) -> (i32, i32) {
    %c0_i32 = arith.constant 0 : i32
    %c0_i32_0 = arith.constant 0 : i32
    %c0_i32_1 = arith.constant 0 : i32
    return %c0_i32, %c0_i32_0 : i32, i32
  }
  func.func @transform_8(%arg0: i32, %arg1: i32) -> (i32, i32) {
    %c0_i32 = arith.constant 0 : i32
    %c0_i32_0 = arith.constant 0 : i32
    %c0_i32_1 = arith.constant 0 : i32
    return %c0_i32, %c0_i32_0 : i32, i32
  }
  func.func @transform_9(%arg0: i32, %arg1: i32) -> (i32, i32) {
    %c0_i32 = arith.constant 0 : i32
    %c0_i32_0 = arith.constant 0 : i32
    %c0_i32_1 = arith.constant 0 : i32
    return %c0_i32, %c0_i32_0 : i32, i32
  }
  func.func @transform_10(%arg0: i32, %arg1: i32) -> (i32, i32, i32) {
    %c0_i32 = arith.constant 0 : i32
    %c0_i32_0 = arith.constant 0 : i32
    return %arg0, %arg1, %c0_i32 : i32, i32, i32
  }
}

</mosaic_0001>

<bundles_post_ra>
// kernel: tpu_custom_call.1
= control target key start
LH: loop header
LB: loop body
LE: loop exit
PB: predicated region body
PF: predicated region fallthrough
CT: control target
= control target key end

     0   :  { %s2553_s0 = inlined_call_operand.vmem [shape: bf16[2,22,128], index: 0, kind: input, shape index: {}]   ;;  %s2554_s1 = inlined_call_operand.hbm [shape: bf16[2,384,128], index: 1, kind: input, shape index: {}]   ;;  %s2555_s2 = inlined_call_operand.vmem [shape: f32[2,1,128], index: 2, kind: input, shape index: {}]   ;;  %s2556_s3 = inlined_call_operand.vmem [shape: f32[2,1,128], index: 3, kind: input, shape index: {}]   ;;  %s2557_s4 = inlined_call_operand.hbm [shape: bf16[128,128], index: 4, kind: input, shape index: {}]   ;;  %s2558_s5 = inlined_call_operand.vmem [shape: f32[1,128], index: 5, kind: input, shape index: {}]   ;;  %s2559_s6 = inlined_call_operand.vmem [shape: f32[1,128], index: 6, kind: input, shape index: {}]   ;;  %s2560_s7 = inlined_call_operand.hbm [shape: bf16[384,128], index: 7, kind: input, shape index: {}]   ;;  %s2561_s8 = inlined_call_operand.vmem [shape: f32[1,128], index: 8, kind: input, shape index: {}]   ;;  %s2562_s9 = inlined_call_operand.vmem [shape: f32[1,128], index: 9, kind: input, shape index: {}]   ;;  %s2563_s10 = inlined_call_operand.hbm [shape: f32[2,16,128], index: 10, kind: output, shape index: {}]  }
   0x1   :  { %2569 = sst [smem:[#allocation18_spill]] %s2557_s4 }
   0x2   :  { %15 = vsyncpa [#allocation3], 0 }
   0x3   :  { %16 = vsyncpa [#allocation6], 0 }
   0x4   :  { %17 = vsyncpa [#allocation4], 0 }
   0x5   :  { %19 = vsyncpa [#allocation4 + $0x1], 0  ;;  %s2348_s13 = smov 0   ;;  %s2350_s14 = smov 0  }
   0x6   :  { %s2352_s15 = smov 0   ;;  %s2354_s16 = smov 0  }
   0x7   :  { %s2356_s17 = smov 0   ;;  %s2358_s18 = smov 0  }
   0x8 LB: > { %2570 = sst [smem:[#allocation12_spill]] %s2264_s13  ;;  %s1583_s19 = sadd.s32 4294967295, %s2284_s18   ;;  %s2284_s18 = sphi %s2358_s18, %s25_s18   ;;  %s2280_s17 = sphi %s2356_s17, %s2587_s17   ;;  %s2276_s16 = sphi %s2354_s16, %s2586_s16   ;;  %s2272_s15 = sphi %s2352_s15, %s2585_s15   ;;  %s2268_s14 = sphi %s2350_s14, %s2589_s14   ;;  %s2264_s13 = sphi %s2348_s13, %s2588_s13  }
   0x9   : > { %2571 = sst [smem:[#allocation13_spill]] %s2272_s15  ;;  %s1584_s20 = sadd.s32 4294967294, %s2284_s18  }
   0xa   : > { %2572 = sst [smem:[#allocation14_spill]] %s2280_s17  ;;  %s37_s21 = sadd.s32 1, %s2280_s17 }
   0xb   : > { %s261_s22 = sadd.s32 1, %s2272_s15  ;;  %p39_p0 = scmp.ge.s32.totalorder %s37_s21, 2 }
   0xc   : > { %p271_p1 = scmp.ne.s32.totalorder %s2272_s15, %s2268_s14  ;;  %p272_p2 = scmp.eq.s32.totalorder %s1583_s19, 1 }
   0xd   : > { %p277_p3 = scmp.ne.s32.totalorder %s2268_s14, %s2264_s13  ;;  %s2591_s21 = smov (%p39_p0, %s37_s21), 0 }
   0xe   : > { %2573 = sst [smem:[#allocation15_spill]] %s2591_s21  ;;  %p2388_p4 = por %p272_p2, %p271_p1 }
   0xf   : > { %p278_p5 = scmp.eq.s32.totalorder %s1584_s20, 1  ;;  %s256_s24 = ssub.s32 %s2280_s17, %s2591_s21 }
  0x10   : > { %p1585_p6 = scmp.ge.s32.totalorder %s2284_s18, 1  ;;  %p259_p7 = scmp.eq.s32.totalorder %s256_s24, 0 }
  0x11   : > { %p2395_p8 = por %p278_p5, %p277_p3  ;;  %p285_p9 = scmp.lt.s32.totalorder %s2284_s18, 3 }
  0x12   : > { %s2401_s26 = scalar_select %p259_p7, %s2272_s15, %s261_s22  }
  0x13   : > { %s2575_s25 = scalar_select %p2395_p8, 1, 0 }
  0x14   : > { %2577 = sst [smem:[#allocation17_spill]] %s2401_s26  ;;  %p2403_p10 = pnand %p1585_p6, %p285_p9 }
  0x15   : > { %2576 = sst [smem:[#allocation16_spill]] %s2575_s25  ;;  %p2407_p11 = scmp.eq.s32.totalorder %s1583_s19, 0 }
  0x16   : > { %p2024_p12 = pneg %p2403_p10  ;;  %s2580_s4 = sld [smem:[#allocation18_spill]] }
  0x17   : > { %s2286_s20 = smov [#allocation5]   ;;  %s2287_s22 = smov 64  }
  0x18   : > { %p2418_p13 = pnand %p2407_p11, %p2024_p12  ;;  %s318_s19 = sshll.u32 %s2286_s20, 4  ;;  %s319_s19 = int_to_ptr.vmem [resolvable:$true] %s318_s19 }
  0x19   : > { %s2288_s24 = smov 4   ;;  %s296_s29 = sshll.u32 %s2554_s1, 4  ;;  %s297_s29 = int_to_ptr.hbm [resolvable:$true] %s296_s29 }
  0x1a   : > { %s2289_s30 = smov [#allocation2]   ;;  %s336_s25 = sshll.u32 %s2560_s7, 4  ;;  %s337_s25 = int_to_ptr.hbm [resolvable:$true] %s336_s25 }
  0x1b   : > { %s2290_s20 = smov [#allocation7]  }
  0x1c   : > { %s316_s11 = sshll.u32 %s2580_s4, 4  ;;  %s298_s4 = sshll.u32 %s2289_s30, 4  ;;  %s317_s11 = int_to_ptr.hbm [resolvable:$true] %s316_s11  ;;  %s299_s4 = int_to_ptr.vmem [resolvable:$true] %s298_s4 }
  0x1d   : > { %2030 = dma.hbm_to_vmem [thread:$0]  (!%p2418_p13), %s317_s11, 1024, %s319_s19, [#allocation6], %s2287_s22, %s2287_s22, %s2288_s24  }
  0x1e   : > { %2027 = dma.hbm_to_vmem [thread:$0]  (!%p2418_p13), %s297_s29, 6144, %s299_s4, [#allocation3], %s2287_s22, %s2287_s22, %s2288_s24  }
  0x1f   : > { %s338_s13 = sshll.u32 %s2290_s20, 4  ;;  %368 = sbr.rel (%p2403_p10) target bundleno = 555 (0x22b), region = 60  ;;  %s339_s13 = int_to_ptr.vmem [resolvable:$true] %s338_s13 }
  0x20   : > { %2033 = dma.hbm_to_vmem [thread:$0]  (!%p2418_p13), %s337_s25, 3072, %s339_s13, [#allocation6], %s2287_s22, %s2287_s22, %s2288_s24  }
  0x24   : > { %2251 = dma.done.wait (%p2407_p11), [#allocation3], 6144  }
  0x25   : > { %2253 = vsyncadd (%p2407_p11), [#allocation3], 4294961152 }
  0x26   : > { %2255 = dma.done.wait (%p2407_p11), [#allocation6], 4096  }
  0x27   : > { %2257 = vsyncadd (%p2407_p11), [#allocation6], 4294963200  ;;  %p417_p0 = scmp.lt.s32.totalorder %s2276_s16, 1  ;;  %v1935_v0 = vld [vmem:[#allocation2 + $0x38] sm:$0xff]  ;;  %v1934_v3 = vld [vmem:[#allocation2 + $0x30] sm:$0xff]  ;;  %vm507_vm1 = vcmask 1046528  }
  0x28   : > { %v1943_v1 = vld [vmem:[#allocation2 + $0x78] sm:$0xff]  ;;  %657 = vmatpush.bf16.msra.mxu0 %v1935_v0  ;;  %v1942_v4 = vld [vmem:[#allocation2 + $0x70] sm:$0xff]  ;;  %v1933_v6 = vld [vmem:[#allocation2 + $0x28] sm:$0xff]  ;;  %vm489_vm0 = vsmask.f32 7424  ;;  %s2008_s26 = sshll.u32 %s2276_s16, 4 }
  0x29   : > { %s418_s4 = scalar_select %p417_p0, %s2276_s16, 1  ;;  %v1951_v2 = vld [vmem:[#allocation2 + $0xb8] sm:$0xff]  ;;  %675 = vmatpush.bf16.msra.mxu1 %v1943_v1  ;;  %v1950_v5 = vld [vmem:[#allocation2 + $0xb0] sm:$0xff]  ;;  %v1941_v7 = vld [vmem:[#allocation2 + $0x68] sm:$0xff]  ;;  %v729_v1 = vlaneseq  ;;  %vm1098_vm4 = vsmask.f32 6400 }
  0x2a   : > { %693 = vmatpush.bf16.msra.mxu2 %v1951_v2  ;;  %v1949_v8 = vld [vmem:[#allocation2 + $0xa8] sm:$0xff]  ;;  %v1932_v9 = vld [vmem:[#allocation2 + $0x20] sm:$0xff]  ;;  %v1931_v13 = vld [vmem:[#allocation2 + $0x18] sm:$0xff]  ;;  %s1473_s11 = scalar_lea.hbm %s2563_s10, %s2008_s26 }
  0x2b   : > { %s2009_s13 = smul.u32 12, %s418_s4  ;;  %v1940_v10 = vld [vmem:[#allocation2 + $0x60] sm:$0xff]  ;;  %v1939_v14 = vld [vmem:[#allocation2 + $0x58] sm:$0xff]  ;;  %v1930_v18 = vld [vmem:[#allocation2 + $0x10] sm:$0xff]  ;;  %s1476_s22 = sshll.u32 %s1473_s11, 4  ;;  %s1477_s22 = int_to_ptr.hbm [resolvable:$true] %s1476_s22 }
  0x2c   : > { %658 = vmatpush.bf16.msra.mxu0 %v1934_v3  ;;  %v1948_v11 = vld [vmem:[#allocation2 + $0xa0] sm:$0xff]  ;;  %v1947_v17 = vld [vmem:[#allocation2 + $0x98] sm:$0xff]  ;;  %v1938_v19 = vld [vmem:[#allocation2 + $0x50] sm:$0xff]  ;;  %s2212_s24 = sshra.s32 %s1477_s22, 4  ;;  %s2218_s4 = scalar_lea.hbm %s2563_s10, 32  ;;  %s2213_s24 = int_to_ptr.hbm [resolvable:$true] %s2212_s24 }
  0x2d   : > { %676 = vmatpush.bf16.msra.mxu1 %v1942_v4  ;;  %s421_s21 = scalar_lea.vmem %s2553_s0, %s2009_s13  ;;  %v1959_v22 = vld [vmem:[#allocation2 + $0xf8] sm:$0xff]  ;;  %v1946_v23 = vld [vmem:[#allocation2 + $0x90] sm:$0xff]  ;;  %v1929_v24 = vld [vmem:[#allocation2 + $0x8] sm:$0xff]  ;;  %s2214_s29 = scalar_lea.hbm %s2213_s24, 16 }
  0x2e   : > { %694 = vmatpush.bf16.msra.mxu2 %v1950_v5  ;;  %v430_v12 = vld [vmem:[%s421_s21 + $0x8] sm:$0x7]  ;;  %v2449_v15 = vld [vmem:[%s421_s21] sm:$0xff]  ;;  %983 = vmatpush.bf16.msra.mxu3 %v1959_v22  ;;  %v1958_v41 = vld [vmem:[#allocation2 + $0xf0] sm:$0xff]  ;;  %s414_s21 = sand.u32 1, %s2268_s14   ;;  %p2215_p1 = scmp.ne.s32.totalorder %s2213_s24, %s2214_s29 }
  0x2f   : > { %v484_v16 = vunpack.c.l.b16 %v430_v12  ;;  %v493_v21 = vshll.u32 %v2449_v15, 16  ;;  %v1937_v25 = vld [vmem:[#allocation2 + $0x48] sm:$0xff]  ;;  %v491_v26 = vshrl.u32 %v2449_v15, 16  ;;  %v1928_v30 = vld [vmem:[#allocation2] sm:$0xff]  ;;  %v508_v35 = vrot.slane %v2449_v15, 1  ;;  %v1975_v44 = vld [vmem:[#allocation2 + $0x178] sm:$0xff]  ;;  %p2219_p5 = scmp.lt.s32.totalorder %s2213_s24, %s2563_s10  ;;  %p2220_p6 = scmp.lt.s32.totalorder %s2218_s4, %s2214_s29 }
  0x30   : > { %659 = vmatpush.bf16.msra.mxu0 %v1933_v6  ;;  %v1945_v29 = vld [vmem:[#allocation2 + $0x88] sm:$0xff]  ;;  %v1936_v31 = vld [vmem:[#allocation2 + $0x40] sm:$0xff]  ;;  %v1967_v45 = vld [vmem:[#allocation2 + $0x138] sm:$0xff]  ;;  %s1594_s25 = sshll.u32 %s414_s21, 4  ;;  %s1460_s16 = scalar_lea.sflag [#allocation4], %s414_s21 }
  0x31   : > { %677 = vmatpush.bf16.msra.mxu1 %v1941_v7  ;;  %v2451_v20 = vpack.c.b16 %v484_v16, %v484_v16  ;;  %v495_v27 = vrot.slane %v493_v21, 1  ;;  %v1944_v34 = vld [vmem:[#allocation2 + $0x80] sm:$0xff]  ;;  %v1957_v42 = vld [vmem:[#allocation2 + $0xe8] sm:$0xff]  ;;  %v1955_v46 = vld [vmem:[#allocation2 + $0xd8] sm:$0xff]  ;;  %s416_s12 = scalar_lea.vmem [#allocation8], %s1594_s25  ;;  %p2216_p2 = pnand %p2215_p1, %p2388_p4 }
  0x32   : > { %695 = vmatpush.bf16.msra.mxu2 %v1949_v8  ;;  %984 = vmatpush.bf16.msra.mxu3 %v1958_v41  ;;  %v1956_v43 = vld [vmem:[#allocation2 + $0xe0] sm:$0xff]  ;;  %v1974_v47 = vld [vmem:[#allocation2 + $0x170] sm:$0xff]  ;;  %v1973_v50 = vld [vmem:[#allocation2 + $0x168] sm:$0xff]  ;;  %v2477_v8 = vshrl.u32 %v729_v1, 7  ;;  %s1474_s19 = sshll.u32 %s416_s12, 4  ;;  %p2221_p7 = por %p2220_p6, %p2219_p5  ;;  %s1475_s19 = int_to_ptr.vmem [resolvable:$true] %s1474_s19 }
  0x33   : > { %v498_v28 = vshll.u32 %v2451_v20, 16  ;;  %v496_v32 = vor.u32 %v495_v27, %v491_v26  ;;  %v509_v36 = vrot.slane %v2451_v20, 1  ;;  %v502_v39 = vshrl.u32 %v2451_v20, 16  ;;  %v1966_v48 = vld [vmem:[#allocation2 + $0x130] sm:$0xff]  ;;  %v1965_v51 = vld [vmem:[#allocation2 + $0x128] sm:$0xff]  ;;  %v1972_v53 = vld [vmem:[#allocation2 + $0x160] sm:$0xff]  ;;  %p2217_p3 = pneg %p2216_p2 }
  0x34   : > { %660 = vmatpush.bf16.msra.mxu0 %v1932_v9  ;;  %v1954_v49 = vld [vmem:[#allocation2 + $0xd0] sm:$0xff]  ;;  %v1953_v52 = vld [vmem:[#allocation2 + $0xc8] sm:$0xff]  ;;  %v1964_v54 = vld [vmem:[#allocation2 + $0x120] sm:$0xff] }
  0x35   : > { %678 = vmatpush.bf16.msra.mxu1 %v1940_v10  ;;  %v500_v33 = vrot.slane %v498_v28, 1  ;;  %v510_v38 = vsel %vm507_vm1, %v508_v35, %v509_v36  ;;  %v1952_v55 = vld [vmem:[#allocation2 + $0xc0] sm:$0xff]  ;;  %v1971_v56 = vld [vmem:[#allocation2 + $0x158] sm:$0xff]  ;;  %v1970_v58 = vld [vmem:[#allocation2 + $0x150] sm:$0xff]  ;;  %p2222_p9 = pnand %p2221_p7, %p2217_p3 }
  0x36   : > { %696 = vmatpush.bf16.msra.mxu2 %v1948_v11  ;;  %985 = vmatpush.bf16.msra.mxu3 %v1957_v42  ;;  %v1963_v57 = vld [vmem:[#allocation2 + $0x118] sm:$0xff]  ;;  %v1962_v59 = vld [vmem:[#allocation2 + $0x110] sm:$0xff]  ;;  %v1969_v62 = vld [vmem:[#allocation2 + $0x148] sm:$0xff] }
  0x37   : > { %v501_v37 = vsel %vm489_vm0, %v496_v32, %v500_v33  ;;  %v504_v40 = vor.u32 %v502_v39, %v500_v33  ;;  %v1961_v63 = vld [vmem:[#allocation2 + $0x108] sm:$0xff]  ;;  %v1968_v2 = vld [vmem:[#allocation2 + $0x140] sm:$0xff]  ;;  %v1982_v1 = vld [vmem:[#allocation5 + $0x30] sm:$0xff] }
  0x38   : > { %661 = vmatpush.bf16.msra.mxu0 %v1931_v13  ;;  %v1960_v3 = vld [vmem:[#allocation2 + $0x100] sm:$0xff]  ;;  %v734_v13 = vadd.s32 4294967294, %v2477_v8 }
  0x39   : > { %679 = vmatpush.bf16.msra.mxu1 %v1939_v14  ;;  %v2100_v4 = vld [vmem:[%s2555_s2] ss:$0 sm:$0xff] }
  0x3a   : > { %697 = vmatpush.bf16.msra.mxu2 %v1947_v17  ;;  %986 = vmatpush.bf16.msra.mxu3 %v1956_v43  ;;  %v2101_v7 = vld [vmem:[%s2556_s3] ss:$0 sm:$0xff]  ;;  %vm737_vm2 = vcmp.ge.s32.totalorder %v734_v13, 0  ;;  %v1986_v13 = vld [vmem:[#allocation7 + $0x10] sm:$0xff] }
  0x3c   : > { %662 = vmatpush.bf16.msra.mxu0 %v1930_v18 }
  0x3d   : > { %680 = vmatpush.bf16.msra.mxu1 %v1938_v19 }
  0x3e   : > { %698 = vmatpush.bf16.msra.mxu2 %v1946_v23  ;;  %987 = vmatpush.bf16.msra.mxu3 %v1955_v46 }
  0x40   : > { %663 = vmatpush.bf16.msra.mxu0 %v1929_v24 }
  0x41   : > { %681 = vmatpush.bf16.msra.mxu1 %v1937_v25 }
  0x42   : > { %699 = vmatpush.bf16.msra.mxu2 %v1945_v29  ;;  %988 = vmatpush.bf16.msra.mxu3 %v1954_v49  ;;  %v2481_v29 = vadd.s32 16, %v2477_v8 }
  0x44   : > { %664 = vmatpush.bf16.msra.mxu0 %v1928_v30 }
  0x45   : > { %682 = vmatpush.bf16.msra.mxu1 %v1936_v31 }
  0x46   : > { %700 = vmatpush.bf16.msra.mxu2 %v1944_v34  ;;  %989 = vmatpush.bf16.msra.mxu3 %v1953_v52 }
  0x47   : > { %665 = vmatmul.bf16.vlgmr.msra.gmra.mxu0 %v2449_v15 }
  0x48   : > { %683 = vmatmul.bf16.vlgmr.msra.gmra.mxu1 %v501_v37  ;;  %1001 = vmatpush.bf16.msrb.mxu0 %v1967_v45  ;;  %v736_v37 = vadd.s32 4294967294, %v2481_v29 }
  0x49   : > { %701 = vmatmul.bf16.vlgmr.msra.gmra.mxu2 %v510_v38  ;;  %1019 = vmatpush.bf16.msrb.mxu1 %v1975_v44 }
  0x4a   : > { %990 = vmatpush.bf16.msra.mxu3 %v1952_v55  ;;  %vm742_vm3 = vcmp.lt.s32.totalorder %v736_v37, 16  ;;  %v1994_v37 = vld [vmem:[#allocation7 + $0x50] sm:$0xff] }
  0x4c   : > { %1002 = vmatpush.bf16.msrb.mxu0 %v1966_v48 }
  0x4d   : > { %1020 = vmatpush.bf16.msrb.mxu1 %v1974_v47 }
  0x50   : > { %1003 = vmatpush.bf16.msrb.mxu0 %v1965_v51 }
  0x51   : > { %1021 = vmatpush.bf16.msrb.mxu1 %v1973_v50 }
  0x54   : > { %1004 = vmatpush.bf16.msrb.mxu0 %v1964_v54 }
  0x55   : > { %1022 = vmatpush.bf16.msrb.mxu1 %v1972_v53 }
  0x57   : > { %670 = vmatmul.bf16.gmra.mxu0 %v2451_v20 }
  0x58   : > { %688 = vmatmul.bf16.gmra.mxu1 %v504_v40  ;;  %1005 = vmatpush.bf16.msrb.mxu0 %v1963_v57 }
  0x59   : > { %706 = vmatmul.bf16.gmra.mxu2 %v509_v36  ;;  %1023 = vmatpush.bf16.msrb.mxu1 %v1971_v56 }
  0x5c   : > { %1006 = vmatpush.bf16.msrb.mxu0 %v1962_v59 }
  0x5d   : > { %1024 = vmatpush.bf16.msrb.mxu1 %v1970_v58 }
  0x60   : > { %1007 = vmatpush.bf16.msrb.mxu0 %v1961_v63  ;;  %v1983_v63 = vld [vmem:[#allocation5 + $0x38] sm:$0xff] }
  0x61   : > { %1025 = vmatpush.bf16.msrb.mxu1 %v1969_v62  ;;  %v1991_v62 = vld [vmem:[#allocation7 + $0x38] sm:$0xff]  ;;  %1155 = vmatpush.bf16.msrb.mxu2 %v1983_v63 }
  0x62   : > { %1399 = vmatpush.bf16.msrb.mxu3 %v1991_v62 }
  0x64   : > { %1008 = vmatpush.bf16.msrb.mxu0 %v1960_v3  ;;  %v1981_v3 = vld [vmem:[#allocation5 + $0x28] sm:$0xff] }
  0x65   : > { %1026 = vmatpush.bf16.msrb.mxu1 %v1968_v2  ;;  %v1989_v2 = vld [vmem:[#allocation7 + $0x28] sm:$0xff]  ;;  %1156 = vmatpush.bf16.msrb.mxu2 %v1982_v1 }
  0x69   : > { %1157 = vmatpush.bf16.msrb.mxu2 %v1981_v3  ;;  %v1060_v3 = vadd.s32 4294967295, %v2481_v29 }
  0x6b   : > { %vm1066_vm6 = vcmp.lt.s32.totalorder %v1060_v3, 16 }
  0xc4   : > { %v666_v60 = vpop.f32.mrf.mxu0 }
  0xc5   : > { %v684_v61 = vpop.f32.mrf.mxu1 }
  0xc6   : > { %v685_v0 = vadd.f32 %v684_v61, %v666_v60 }
  0xcc   : > { %v702_v5 = vpop.f32.mrf.mxu2  ;;  %v668_v9 = vpop.f32.mrf.mxu0 }
  0xcd   : > { %v703_v6 = vadd.f32 %v702_v5, %v685_v0  ;;  %v686_v10 = vpop.f32.mrf.mxu1  ;;  %v1990_v0 = vld [vmem:[#allocation7 + $0x30] sm:$0xff]  ;;  %v2007_v5 = vld [vmem:[#allocation7 + $0xb8] sm:$0xff] }
  0xce   : > { %v687_v14 = vadd.f32 %v686_v10, %v668_v9  ;;  %1400 = vmatpush.bf16.msrb.mxu3 %v1990_v0  ;;  %1427 = vmatpush.bf16.msra.mxu1 %v2007_v5  ;;  %v1987_v9 = vld [vmem:[#allocation7 + $0x18] sm:$0xff]  ;;  %v2006_v10 = vld [vmem:[#allocation7 + $0xb0] sm:$0xff] }
  0xcf   : > { %v715_v11 = vmul.f32 %v2100_v4, %v703_v6  ;;  %v1999_v6 = vld [vmem:[#allocation7 + $0x78] sm:$0xff] }
  0xd0   : > { %1413 = vmatpush.bf16.msra.mxu0 %v1999_v6 }
  0xd1   : > { %v722_v12 = vadd.f32 %v2101_v7, %v715_v11  ;;  %v1998_v11 = vld [vmem:[#allocation7 + $0x70] sm:$0xff] }
  0xd2   : > { %1401 = vmatpush.bf16.msrb.mxu3 %v1989_v2  ;;  %1428 = vmatpush.bf16.msra.mxu1 %v2006_v10 }
  0xd3   : > { %v725_v16 = vmax.f32 %v722_v12, 0.0  ;;  %v1979_v12 = vld [vmem:[#allocation5 + $0x18] sm:$0xff] }
  0xd4   : > { %v704_v17 = vpop.f32.mrf.mxu2  ;;  %v671_v19 = vpop.f32.mrf.mxu0  ;;  %1414 = vmatpush.bf16.msra.mxu0 %v1998_v11 }
  0xd5   : > { %v705_v18 = vadd.f32 %v704_v17, %v687_v14  ;;  %v689_v22 = vpop.f32.mrf.mxu1  ;;  %v752_v24 = vsel %vm737_vm2, %v725_v16, 0.0  ;;  %v2005_v14 = vld [vmem:[#allocation7 + $0xa8] sm:$0xff]  ;;  %v1978_v17 = vld [vmem:[#allocation5 + $0x10] sm:$0xff] }
  0xd6   : > { %v690_v27 = vadd.f32 %v689_v22, %v671_v19  ;;  %v755_v30 = vpack.c.bf16 %v752_v24, %v752_v24  ;;  %v1997_v16 = vld [vmem:[#allocation7 + $0x68] sm:$0xff]  ;;  %1429 = vmatpush.bf16.msra.mxu1 %v2005_v14  ;;  %v2004_v19 = vld [vmem:[#allocation7 + $0xa0] sm:$0xff] }
  0xd7   : > { %v716_v23 = vmul.f32 %v2100_v4, %v705_v18  ;;  %v1985_v18 = vld [vmem:[#allocation7 + $0x8] sm:$0xff]  ;;  %v1996_v22 = vld [vmem:[#allocation7 + $0x60] sm:$0xff] }
  0xd8   : > { %v810_v38 = vunpack.c.l.b16 %v755_v30  ;;  %1415 = vmatpush.bf16.msra.mxu0 %v1997_v16  ;;  %v1984_v24 = vld [vmem:[#allocation7] sm:$0xff]  ;;  %v1995_v30 = vld [vmem:[#allocation7 + $0x58] sm:$0xff] }
  0xd9   : > { %v723_v25 = vadd.f32 %v2101_v7, %v716_v23  ;;  %v1977_v23 = vld [vmem:[#allocation5 + $0x8] sm:$0xff] }
  0xda   : > { %1430 = vmatpush.bf16.msra.mxu1 %v2004_v19 }
  0xdb   : > { %v726_v31 = vmax.f32 %v723_v25, 0.0  ;;  %v2003_v25 = vld [vmem:[#allocation7 + $0x98] sm:$0xff] }
  0xdc   : > { %v707_v32 = vpop.f32.mrf.mxu2  ;;  %v673_v35 = vpop.f32.mrf.mxu0  ;;  %1416 = vmatpush.bf16.msra.mxu0 %v1996_v22 }
  0xdd   : > { %v756_v33 = vpack.c.bf16 %v726_v31, %v726_v31  ;;  %v708_v34 = vadd.f32 %v707_v32, %v690_v27  ;;  %v691_v36 = vpop.f32.mrf.mxu1  ;;  %v1102_v27 = vrot.slane %v502_v39, 1  ;;  %v1976_v32 = vld [vmem:[#allocation5] sm:$0xff]  ;;  %v1100_v35 = vrot.slane %v493_v21, 2 }
  0xde   : > { %1431 = vmatpush.bf16.msra.mxu1 %v2003_v25  ;;  %v1103_v36 = vrot.slane %v498_v28, 2  ;;  %v1992_v21 = vld [vmem:[#allocation7 + $0x40] sm:$0xff] }
  0xdf   : > { %v811_v40 = vunpack.c.l.b16 %v756_v33  ;;  %v717_v41 = vmul.f32 %v2100_v4, %v708_v34  ;;  %v1988_v4 = vld [vmem:[#allocation7 + $0x20] sm:$0xff]  ;;  %v2002_v33 = vld [vmem:[#allocation7 + $0x90] sm:$0xff]  ;;  %v1099_v34 = vrot.slane %v491_v26, 1 }
  0xe0   : > { %1402 = vmatpush.bf16.msrb.mxu3 %v1988_v4  ;;  %1417 = vmatpush.bf16.msra.mxu0 %v1995_v30  ;;  %v2000_v26 = vld [vmem:[#allocation7 + $0x80] sm:$0xff] }
  0xe1   : > { %v724_v42 = vadd.f32 %v2101_v7, %v717_v41  ;;  %v813_v43 = vpack.c.b16 %v811_v40, %v810_v38  ;;  %v1980_v7 = vld [vmem:[#allocation5 + $0x20] sm:$0xff]  ;;  %v1101_v39 = vor.u32 %v1100_v35, %v1099_v34  ;;  %v1104_v38 = vor.u32 %v1103_v36, %v1102_v27  ;;  %v2001_v41 = vld [vmem:[#allocation7 + $0x88] sm:$0xff] }
  0xe2   : > { %1158 = vmatpush.bf16.msrb.mxu2 %v1980_v7  ;;  %1432 = vmatpush.bf16.msra.mxu1 %v2002_v33  ;;  %v2102_v28 = vld [vmem:[%s2555_s2 + $0x1] ss:$0 sm:$0xff] }
  0xe3   : > { %v727_v44 = vmax.f32 %v724_v42, 0.0  ;;  %991 = vmatmul.bf16.vlgmr.msra.gmra.mxu3 %v813_v43  ;;  %v820_v48 = vshll.u32 %v813_v43, 16  ;;  %v834_v52 = vrot.slane %v813_v43, 1  ;;  %v818_v54 = vshrl.u32 %v813_v43, 16  ;;  %v1993_v43 = vld [vmem:[#allocation7 + $0x48] sm:$0xff] }
  0xe4   : > { %v709_v45 = vpop.f32.mrf.mxu2  ;;  %1403 = vmatpush.bf16.msrb.mxu3 %v1987_v9  ;;  %1418 = vmatpush.bf16.msra.mxu0 %v1994_v37  ;;  %v1105_v40 = vsel %vm1098_vm4, %v1101_v39, %v1104_v38  ;;  %v2105_v37 = vld [vmem:[%s2559_s6] ss:$0 sm:$0xff] }
  0xe5   : > { %v754_v46 = vsel %vm742_vm3, %v727_v44, 0.0  ;;  %v822_v51 = vrot.slane %v820_v48, 1  ;;  %v2106_v38 = vld [vmem:[%s2561_s8] ss:$0 sm:$0xff] }
  0xe6   : > { %v757_v47 = vpack.c.bf16 %v754_v46, %v754_v46  ;;  %1159 = vmatpush.bf16.msrb.mxu2 %v1979_v12  ;;  %1433 = vmatpush.bf16.msra.mxu1 %v2001_v41  ;;  %v2103_v46 = vld [vmem:[%s2556_s3 + $0x1] ss:$0 sm:$0xff]  ;;  %v2107_v41 = vld [vmem:[%s2562_s9] ss:$0 sm:$0xff] }
  0xe7   : > { %v823_v57 = vor.u32 %v822_v51, %v818_v54 }
  0xe8   : > { %v812_v49 = vunpack.c.l.b16 %v757_v47  ;;  %1404 = vmatpush.bf16.msrb.mxu3 %v1986_v13  ;;  %1419 = vmatpush.bf16.msra.mxu0 %v1993_v43 }
  0xea   : > { %v814_v50 = vpack.c.b16 %v812_v49, %v812_v49  ;;  %1160 = vmatpush.bf16.msrb.mxu2 %v1978_v17  ;;  %1434 = vmatpush.bf16.msra.mxu1 %v2000_v26 }
  0xec   : > { %v835_v53 = vrot.slane %v814_v50, 1  ;;  %v825_v55 = vshll.u32 %v814_v50, 16  ;;  %v829_v60 = vshrl.u32 %v814_v50, 16  ;;  %1405 = vmatpush.bf16.msrb.mxu3 %v1985_v18  ;;  %1420 = vmatpush.bf16.msra.mxu0 %v1992_v21 }
  0xee   : > { %v836_v56 = vsel %vm507_vm1, %v834_v52, %v835_v53  ;;  %v827_v58 = vrot.slane %v825_v55, 1  ;;  %1161 = vmatpush.bf16.msrb.mxu2 %v1977_v23 }
  0xef   : > { %1027 = vmatmul.bf16.vlgmr.msrb.gmra.mxu1 %v836_v56 }
  0xf0   : > { %v828_v59 = vsel %vm489_vm0, %v823_v57, %v827_v58  ;;  %v831_v61 = vor.u32 %v829_v60, %v827_v58  ;;  %1406 = vmatpush.bf16.msrb.mxu3 %v1984_v24 }
  0xf1   : > { %1009 = vmatmul.bf16.vlgmr.msrb.gmra.mxu0 %v828_v59 }
  0xf2   : > { %1162 = vmatpush.bf16.msrb.mxu2 %v1976_v32  ;;  %v2104_v32 = vld [vmem:[%s2558_s5] ss:$0 sm:$0xff] }
  0xf3   : > { %996 = vmatmul.bf16.gmra.mxu3 %v814_v50  ;;  %v1058_v50 = vadd.s32 4294967295, %v2477_v8 }
  0xf5   : > { %1163 = vmatmul.bf16.vlgmr.msrb.gmra.mxu2 %v1105_v40  ;;  %vm1061_vm5 = vcmp.ge.s32.totalorder %v1058_v50, 0 }
  0xff   : > { %1032 = vmatmul.bf16.gmra.mxu1 %v835_v53 }
 0x101   : > { %1014 = vmatmul.bf16.gmra.mxu0 %v831_v61 }
 0x166   : > { %v992_v31 = vpop.f32.mrf.mxu3 }
 0x16c   : > { %v1028_v42 = vpop.f32.mrf.mxu1 }
 0x16e   : > { %v994_v44 = vpop.f32.mrf.mxu3  ;;  %v1010_v15 = vpop.f32.mrf.mxu0 }
 0x16f   : > { %v1011_v20 = vadd.f32 %v1010_v15, %v992_v31 }
 0x171   : > { %v1029_v45 = vadd.f32 %v1028_v42, %v1011_v20 }
 0x173   : > { %v1042_v47 = vmul.f32 %v2102_v28, %v1029_v45 }
 0x174   : > { %v1030_v48 = vpop.f32.mrf.mxu1 }
 0x175   : > { %v1050_v49 = vadd.f32 %v2103_v46, %v1042_v47 }
 0x176   : > { %v997_v51 = vpop.f32.mrf.mxu3  ;;  %v1012_v52 = vpop.f32.mrf.mxu0 }
 0x177   : > { %v1013_v53 = vadd.f32 %v1012_v52, %v994_v44  ;;  %v1053_v54 = vmax.f32 %v1050_v49, 0.0 }
 0x178   : > { %v1164_v31 = vpop.f32.mrf.mxu2 }
 0x179   : > { %v1031_v55 = vadd.f32 %v1030_v48, %v1013_v53  ;;  %v1076_v57 = vsel %vm1061_vm5, %v1053_v54, 0.0  ;;  %v1173_v36 = vmul.f32 %v2104_v32, %v1164_v31 }
 0x17a   : > { %v1079_v62 = vpack.c.bf16 %v1076_v57, %v1076_v57 }
 0x17b   : > { %v1043_v56 = vmul.f32 %v2102_v28, %v1031_v55  ;;  %v1179_v42 = vadd.f32 %v2105_v37, %v1173_v36 }
 0x17c   : > { %v1033_v58 = vpop.f32.mrf.mxu1  ;;  %v1231_v5 = vunpack.c.l.b16 %v1079_v62 }
 0x17d   : > { %v1051_v59 = vadd.f32 %v2103_v46, %v1043_v56 }
 0x17e   : > { %v999_v60 = vpop.f32.mrf.mxu3  ;;  %v1015_v61 = vpop.f32.mrf.mxu0 }
 0x17f   : > { %v1054_v63 = vmax.f32 %v1051_v59, 0.0  ;;  %v1016_v0 = vadd.f32 %v1015_v61, %v997_v51 }
 0x180   : > { %v1166_v44 = vpop.f32.mrf.mxu2 }
 0x181   : > { %v1080_v1 = vpack.c.bf16 %v1054_v63, %v1054_v63  ;;  %v1034_v2 = vadd.f32 %v1033_v58, %v1016_v0  ;;  %v1174_v47 = vmul.f32 %v2104_v32, %v1166_v44 }
 0x183   : > { %v1232_v8 = vunpack.c.l.b16 %v1080_v1  ;;  %v1044_v4 = vmul.f32 %v2102_v28, %v1034_v2  ;;  %v1180_v50 = vadd.f32 %v2105_v37, %v1174_v47 }
 0x184   : > { %v1035_v6 = vpop.f32.mrf.mxu1 }
 0x185   : > { %v1052_v7 = vadd.f32 %v2103_v46, %v1044_v4  ;;  %v1233_v9 = vpack.c.b16 %v1232_v8, %v1231_v5 }
 0x186   : > { %v1017_v10 = vpop.f32.mrf.mxu0 }
 0x187   : > { %v1055_v11 = vmax.f32 %v1052_v7, 0.0  ;;  %1407 = vmatmul.bf16.vlgmr.msrb.gmra.mxu3 %v1233_v9  ;;  %v1241_v14 = vshll.u32 %v1233_v9, 16  ;;  %v1251_v19 = vrot.slane %v1233_v9, 1  ;;  %v1239_v23 = vshrl.u32 %v1233_v9, 16 }
 0x189   : > { %v1078_v12 = vsel %vm1066_vm6, %v1055_v11, 0.0  ;;  %v1243_v18 = vrot.slane %v1241_v14, 1 }
 0x18a   : > { %v1081_v13 = vpack.c.bf16 %v1078_v12, %v1078_v12 }
 0x18b   : > { %v1244_v25 = vor.u32 %v1243_v18, %v1239_v23 }
 0x18c   : > { %v1236_v16 = vunpack.c.l.b16 %v1081_v13 }
 0x18e   : > { %v1237_v17 = vpack.c.b16 %v1236_v16, %v1236_v16 }
 0x190   : > { %v1252_v22 = vrot.slane %v1237_v17, 1  ;;  %v1246_v29 = vshll.u32 %v1237_v17, 16 }
 0x192   : > { %v1253_v24 = vsel %vm507_vm1, %v1251_v19, %v1252_v22  ;;  %v1248_v27 = vrot.slane %v1246_v29, 1 }
 0x193   : > { %1435 = vmatmul.bf16.vlgmr.msra.gmra.mxu1 %v1253_v24 }
 0x194   : > { %v1249_v30 = vsel %vm489_vm0, %v1244_v25, %v1248_v27 }
 0x195   : > { %1421 = vmatmul.bf16.vlgmr.msra.gmra.mxu0 %v1249_v30 }
 0x20a   : > { %v1408_v33 = vpop.f32.mrf.mxu3 }
 0x210   : > { %v1436_v34 = vpop.f32.mrf.mxu1 }
 0x212   : > { %v1422_v35 = vpop.f32.mrf.mxu0  ;;  %v1410_v15 = vpop.f32.mrf.mxu3 }
 0x213   : > { %v1423_v39 = vadd.f32 %v1422_v35, %v1408_v33 }
 0x215   : > { %v1437_v40 = vadd.f32 %v1436_v34, %v1423_v39 }
 0x217   : > { %v1445_v43 = vmul.f32 %v2106_v38, %v1437_v40 }
 0x218   : > { %v1438_v45 = vpop.f32.mrf.mxu1 }
 0x219   : > { %v1451_v26 = vadd.f32 %v2107_v41, %v1445_v43 }
 0x21a   : > { %v1424_v21 = vpop.f32.mrf.mxu0 }
 0x21b   : > { %v1453_v20 = vadd.f32 %v1451_v26, %v1179_v42  ;;  %v1425_v28 = vadd.f32 %v1424_v21, %v1410_v15 }
 0x21d   : > { %v1455_v46 = vmax.f32 %v1453_v20, 0.0  ;;  %v1439_v48 = vadd.f32 %v1438_v45, %v1425_v28 }
 0x21f   : > { %1457 = vst [vmem:[%s416_s12] sm:$0xff] %v1455_v46  ;;  %v1446_v49 = vmul.f32 %v2106_v38, %v1439_v48 }
 0x221   : > { %v1452_v51 = vadd.f32 %v2107_v41, %v1446_v49 }
 0x223   : > { %v1454_v52 = vadd.f32 %v1452_v51, %v1180_v50 }
 0x225   : > { %v1456_v53 = vmax.f32 %v1454_v52, 0.0 }
 0x227   : > { %1458 = vst [vmem:[%s416_s12 + $0x8] sm:$0xff] %v1456_v53 }
 0x228   : > { %2225 = shalt.err (!%p2222_p9)
}
 0x229   : > { %s2291_s17 = smov 128   ;;  %s2292_s21 = smov 8  }
 0x22a   : > { %2022 = dma.vmem_to_hbm [thread:$0]  (%p2388_p4), %s1475_s19, 256, %s1477_s22, %s1460_s16, %s2291_s17, %s2291_s17, %s2292_s21  }
 0x22b PF: > { %s2582_s25 = sld [smem:[#allocation12_spill]]  ;;  %p2044_p10 = scmp.ge.s32.totalorder %s2284_s18, 2 }
 0x22d   : > { %p2035_p11 = pnand %p2044_p10, %p2395_p8 }
 0x22f   : > { %p2036_p12 = pneg %p2035_p11 }
 0x231   : > { %s1491_s27 = sand.u32 1, %s2582_s25  }
 0x232   : > { %s1492_s28 = scalar_lea.sflag [#allocation4], %s1491_s27 }
 0x233   : > { %2259 = dma.done.wait (%p2036_p12), %s1492_s28, 256  }
 0x234   : > { %2261 = vsyncadd (%p2036_p12), %s1492_s28, 4294967040  ;;  %s25_s18 = sadd.s32 1, %s2284_s18   ;;  %s2584_s11 = sld [smem:[#allocation13_spill]] }
 0x235   : > { %p22_p13 = scmp.ge.s32.totalorder %s25_s18, 4   ;;  %s2585_s15 = sld [smem:[#allocation17_spill]] }
 0x236   : > { %s2586_s16 = sld [smem:[#allocation14_spill]]  ;;  %s2588_s13 = smov %s2268_s14 }
 0x237   : > { %s2587_s17 = sld [smem:[#allocation15_spill]]  ;;  %24 = sbr.rel (!%p22_p13) target bundleno = 8 (0x8), region = 112 }
 0x23a   : > { %s2589_s14 = smov %s2584_s11 }
 0x23c   :  { %1498 = vsyncpa [#allocation3], 1 }
 0x23d   :  { %1500 = vsyncpa [#allocation3 + $0x1], 1 }
 0x23e   :  { %1501 = vsyncpa [#allocation6], 1 }
 0x23f   :  { %1502 = vsyncpa [#allocation4], 1 }
 0x240   :  { %1504 = vsyncpa [#allocation4 + $0x1], 1 }

</bundles_post_ra>
